<compile_context>
chip_gen: v5e
topology: v5e:2x2
jax: 0.10.0
libtpu: 0.0.40
codegen_flags: <defaults>
</compile_context>

<pallas_src>
import functools
import math

import numpy as np
import jax
import jax.numpy as jnp
from jax.experimental import pallas as pl
from jax.experimental.pallas import tpu as pltpu


_VMEM_LIMIT = 48 * 1024 * 1024   # <= v7x physical 64 MiB; comfortable on v5e/v6e


# -----------------------------------------------------------------------------
# Pallas kernels
# -----------------------------------------------------------------------------
def _matmul_kernel(*refs, relu, has_bn, has_res, dual):
    i = 0
    a_ref = refs[i]; i += 1
    w_ref = refs[i]; i += 1
    b_ref = refs[i]; i += 1
    scale_ref = shift_ref = res_ref = None
    if has_bn:
        scale_ref = refs[i]; i += 1
        shift_ref = refs[i]; i += 1
    if has_res:
        res_ref = refs[i]; i += 1
    if dual:
        raw_ref = refs[i]; i += 1
    out_ref = refs[i]

    acc = jnp.dot(a_ref[...], w_ref[...], preferred_element_type=jnp.float32)
    acc = acc + b_ref[...]
    if dual:
        raw_ref[...] = acc.astype(raw_ref.dtype)           # raw conv features
    y = acc
    if has_res:
        # residual added BEFORE the BN scale/shift: relu(bn(conv(x) + res))
        y = y + res_ref[...].astype(jnp.float32)
    if has_bn:
        y = y * scale_ref[...] + shift_ref[...]
    if relu:
        y = jnp.maximum(y, 0.0)
    out_ref[...] = y.astype(out_ref.dtype)


def fused_matmul(a, w, b, scale=None, shift=None, res=None, relu=False,
                 dual=False, out_dtype=jnp.float32):
    """out = [relu]((A@W + b [+ res]) [*scale + shift]); bf16 MXU, f32 epilogue.

    dual=True additionally emits the raw (A@W + b) as a first output (used to
    fuse conv + BN/ReLU when the raw features are also needed downstream).
    """
    a = a.astype(jnp.bfloat16)
    w = w.astype(jnp.bfloat16)
    b = b.astype(jnp.float32)
    M, K = a.shape
    N = w.shape[1]
    has_bn = scale is not None
    has_res = res is not None
    if dual:
        assert has_bn and not has_res

    if M % 256 == 0:
        tm = 256                      # 2 grid steps for the conv path (M=512)
    elif M % 128 == 0:
        tm = 128
    else:
        tm = M                        # tiny-batch linear layers
    grid = (M // tm,)

    inputs = [a, w, b]
    in_specs = [
        pl.BlockSpec((tm, K), lambda i: (i, 0)),
        pl.BlockSpec((K, N), lambda i: (0, 0)),
        pl.BlockSpec((1, N), lambda i: (0, 0)),
    ]
    if has_bn:
        scale = scale.astype(jnp.float32)
        shift = shift.astype(jnp.float32)
        if scale.shape[0] == 1:
            s_spec = pl.BlockSpec((1, N), lambda i: (0, 0))
        else:                         # per-row folded BN (batched lin_so call)
            s_spec = pl.BlockSpec((tm, N), lambda i: (i, 0))
        inputs += [scale, shift]
        in_specs += [s_spec, s_spec]
    if has_res:
        inputs.append(res)
        in_specs.append(pl.BlockSpec((tm, N), lambda i: (i, 0)))

    kernel = functools.partial(_matmul_kernel, relu=relu, has_bn=has_bn,
                               has_res=has_res, dual=dual)
    if dual:
        out_shape = (jax.ShapeDtypeStruct((M, N), out_dtype),
                     jax.ShapeDtypeStruct((M, N), out_dtype))
        out_specs = (pl.BlockSpec((tm, N), lambda i: (i, 0)),
                     pl.BlockSpec((tm, N), lambda i: (i, 0)))
    else:
        out_shape = jax.ShapeDtypeStruct((M, N), out_dtype)
        out_specs = pl.BlockSpec((tm, N), lambda i: (i, 0))

    return pl.pallas_call(
        kernel,
        out_shape=out_shape,
        grid=grid,
        in_specs=in_specs,
        out_specs=out_specs,
        compiler_params=pltpu.CompilerParams(
            dimension_semantics=("parallel",),
            vmem_limit_bytes=_VMEM_LIMIT),
    )(*inputs)


def _fc_wsum_kernel(a_ref, w_ref, b_ref, p_ref, o_ref):
    logits = jnp.dot(a_ref[...], w_ref[...],
                     preferred_element_type=jnp.float32) + b_ref[...]
    o_ref[...] = jnp.sum(logits * p_ref[...], axis=1, keepdims=True)


def fc_weighted_sum(x, w, b, predicate):
    """sum((x @ W + b) * predicate, axis=1) fused into one tiny kernel."""
    B = x.shape[0]
    out = pl.pallas_call(
        _fc_wsum_kernel,
        out_shape=jax.ShapeDtypeStruct((B, 1), jnp.float32),
    )(x.astype(jnp.float32), w.astype(jnp.float32), b.astype(jnp.float32),
      predicate.astype(jnp.float32))
    return out.reshape(B)


# -----------------------------------------------------------------------------
# JAX glue: im2col for 3x3 same-padding convolution, conv wrappers
# -----------------------------------------------------------------------------
def im2col3x3(x):
    """x: (N,H,W,C) -> (N*H*W, 9*C) with patch order (kh, kw, cin), bf16."""
    x = x.astype(jnp.bfloat16)
    N, H, W, C = x.shape
    xp = jnp.pad(x, ((0, 0), (1, 1), (1, 1), (0, 0)))
    cols = [xp[:, i:i + H, j:j + W, :] for i in range(3) for j in range(3)]
    patches = jnp.stack(cols, axis=3)               # (N,H,W,9,C)
    return patches.reshape(N * H * W, 9 * C)


def conv3x3(x, w, b, scale=None, shift=None, res=None, relu=False):
    """3x3 same-pad conv; x:(N,H,W,Cin), w:(9*Cin,Cout) -> (N,H,W,Cout) bf16."""
    N, H, W, _ = x.shape
    Cout = w.shape[1]
    A = im2col3x3(x)
    res_flat = None if res is None else res.reshape(N * H * W, Cout)
    y = fused_matmul(A, w, b, scale=scale, shift=shift, res=res_flat,
                     relu=relu, out_dtype=jnp.bfloat16)
    return y.reshape(N, H, W, Cout)


def conv3x3_dual(x, w, b, scale, shift):
    """Same as conv3x3 but returns (raw conv+bias, relu(bn(conv+bias)))."""
    N, H, W, _ = x.shape
    Cout = w.shape[1]
    A = im2col3x3(x)
    raw, bn = fused_matmul(A, w, b, scale=scale, shift=shift, relu=True,
                           dual=True, out_dtype=jnp.bfloat16)
    return raw.reshape(N, H, W, Cout), bn.reshape(N, H, W, Cout)


# -----------------------------------------------------------------------------
# Host-side roi_pool / union_bbox (data-dependent shapes; exact PyTorch semantics)
# -----------------------------------------------------------------------------
def roi_pool_nhwc_np(x, rois, out_size):
    """x: (N,H,W,C) float32 numpy -> (N,C,out,out) (torch layout for .view(B,-1))."""
    N, H, W, C = x.shape
    out = np.zeros((N, C, out_size, out_size), dtype=np.float32)
    for i in range(N):
        bbox = [int(rois[i][0] * H), int(rois[i][1] * H),
                int(rois[i][2] * W), int(rois[i][3] * W)]
        if bbox[1] <= bbox[0]:
            if bbox[0] > 0:
                bbox[0] -= 1
            else:
                bbox[1] += 1
        if bbox[3] <= bbox[2]:
            if bbox[2] > 0:
                bbox[2] -= 1
            else:
                bbox[3] += 1
        l = out_size * math.ceil(max(bbox[2], bbox[3]) / out_size)
        crop = x[i, bbox[0]:bbox[1], bbox[2]:bbox[3], :]        # (h, w, C)
        h, w = crop.shape[0], crop.shape[1]
        ri = (np.arange(l) * h) // l                            # nearest interp
        ci = (np.arange(l) * w) // l
        interp = crop[ri][:, ci]                                # (l, l, C)
        k = l // out_size
        pooled = interp.reshape(out_size, k, out_size, k, C).max(axis=(1, 3))
        out[i] = pooled.transpose(2, 0, 1)
    return out


def union_bbox_np(a, b):
    return np.stack([np.minimum(a[:, 0], b[:, 0]), np.maximum(a[:, 1], b[:, 1]),
                     np.minimum(a[:, 2], b[:, 2]), np.maximum(a[:, 3], b[:, 3])],
                    axis=1)


# -----------------------------------------------------------------------------
# Deterministic parameter construction + inference-time folding/fusing
# -----------------------------------------------------------------------------
def _normal(key, shape, std):
    return jax.random.normal(key, shape, jnp.float32) * std


def _conv_params(key, cin, cout):
    k1, k2 = jax.random.split(key)
    std = 1.0 / np.sqrt(9 * cin)
    w = _normal(k1, (3, 3, cin, cout), std).reshape(9 * cin, cout)  # (kh,kw,cin)
    b = _normal(k2, (1, cout), 0.01)
    return w, b


def _linear_params(key, fin, fout):
    k1, k2 = jax.random.split(key)
    std = 1.0 / np.sqrt(fin)
    w = _normal(k1, (fin, fout), std)
    b = _normal(k2, (1, fout), 0.01)
    return w, b


def _bn_params(key, c, eps=1e-5):
    k1, k2, k3, k4 = jax.random.split(key, 4)
    gamma = 1.0 + _normal(k1, (1, c), 0.1)
    beta = _normal(k2, (1, c), 0.1)
    mean = _normal(k3, (1, c), 0.05)
    var = 1.0 + jnp.abs(_normal(k4, (1, c), 0.1))
    scale = gamma * jax.lax.rsqrt(var + eps)
    shift = beta - mean * scale
    return scale, shift


def init_params(key, roi_size):
    rs2 = roi_size * roi_size
    keys = iter(jax.random.split(key, 32))
    p = {}
    # backbone substitute (see TODO(synk)): 3 -> 64 -> 256, then layer4-like 256 -> 512
    p['bb1'] = _conv_params(next(keys), 3, 64)
    p['bb2'] = _conv_params(next(keys), 64, 256)
    p['pre'] = _conv_params(next(keys), 256, 512)       # shared by pre_pmps1_so / _p
    # pmps1 convs
    p['conv_so'] = _conv_params(next(keys), 512, 128)
    p['conv_p'] = _conv_params(next(keys), 512, 128)
    p['conv_so2p'] = _conv_params(next(keys), 128, 128)
    p['conv_p2s'] = _conv_params(next(keys), 128, 128)
    p['conv_p2o'] = _conv_params(next(keys), 128, 128)
    # pmps1 batchnorms (folded to scale/shift)
    p['bn_gso'] = _bn_params(next(keys), 128)
    p['bn_gp'] = _bn_params(next(keys), 128)
    p['bn_bp'] = _bn_params(next(keys), 128)
    p['bn_bs'] = _bn_params(next(keys), 128)
    p['bn_bo'] = _bn_params(next(keys), 128)
    # pmps2 linears
    p['lin_so'] = _linear_params(next(keys), 256 * rs2, 32 * rs2)
    p['lin_p'] = _linear_params(next(keys), 256 * rs2, 32 * rs2)
    p['lin_s2p'] = _linear_params(next(keys), 32 * rs2, 32 * rs2)
    p['lin_o2p'] = _linear_params(next(keys), 32 * rs2, 32 * rs2)
    p['lin_bp'] = _linear_params(next(keys), 32 * rs2, 4 * rs2)
    # pmps2 batchnorms (1d, folded)
    p['bn1d_s'] = _bn_params(next(keys), 32 * rs2)
    p['bn1d_o'] = _bn_params(next(keys), 32 * rs2)
    p['bn1d_p'] = _bn_params(next(keys), 32 * rs2)
    p['bn1d_bp'] = _bn_params(next(keys), 4 * rs2)
    # final classifier
    p['fc'] = _linear_params(next(keys), 4 * rs2, 9)
    return p


def prepare_params(p):
    """One-time host-side folding/fusing into inference-ready (bf16) weights."""
    bf = lambda w: w.astype(jnp.bfloat16)
    q = {}
    q['bb1_w'], q['bb1_b'] = bf(p['bb1'][0]), p['bb1'][1]
    q['bb2_w'], q['bb2_b'] = bf(p['bb2'][0]), p['bb2'][1]
    q['pre_w'], q['pre_b'] = bf(p['pre'][0]), p['pre'][1]

    # fused pmps1_conv_so + pmps1_conv_p (same LHS: pre_pmps1_p == pre_pmps1_so)
    q['sp_w'] = bf(jnp.concatenate([p['conv_so'][0], p['conv_p'][0]], axis=1))
    q['sp_b'] = jnp.concatenate([p['conv_so'][1], p['conv_p'][1]], axis=1)
    q['sp_scale'] = jnp.concatenate([p['bn_gso'][0], p['bn_bp'][0]], axis=1)
    q['sp_shift'] = jnp.concatenate([p['bn_gso'][1], p['bn_bp'][1]], axis=1)

    q['so2p_w'], q['so2p_b'] = bf(p['conv_so2p'][0]), p['conv_so2p'][1]
    q['gp_scale'], q['gp_shift'] = p['bn_gp']

    # fused conv_p2s + conv_p2o (same LHS: broadcast_p)
    q['pspo_w'] = bf(jnp.concatenate([p['conv_p2s'][0], p['conv_p2o'][0]], axis=1))
    q['pspo_b'] = jnp.concatenate([p['conv_p2s'][1], p['conv_p2o'][1]], axis=1)
    q['pspo_scale'] = jnp.concatenate([p['bn_bs'][0], p['bn_bo'][0]], axis=1)
    q['pspo_shift'] = jnp.concatenate([p['bn_bs'][1], p['bn_bo'][1]], axis=1)

    # pmps2: shared gather linear (BN differs per use -> per-row scale/shift)
    q['lin_so_w'], q['lin_so_b'] = bf(p['lin_so'][0]), p['lin_so'][1]
    q['bn1d_s'], q['bn1d_o'] = p['bn1d_s'], p['bn1d_o']

    # fused gather_p path: [lin_p; lin_s2p; lin_o2p] stacked on K, bn1d_p folded in
    w_cat = jnp.concatenate([p['lin_p'][0], p['lin_s2p'][0], p['lin_o2p'][0]], axis=0)
    b_cat = p['lin_p'][1] + p['lin_s2p'][1] + p['lin_o2p'][1]
    s, t = p['bn1d_p']
    q['lin_pcat_w'] = bf(w_cat * s)
    q['lin_pcat_b'] = b_cat * s + t

    # broadcast_p linear with bn1d_bp folded
    s, t = p['bn1d_bp']
    q['lin_bp_w'] = bf(p['lin_bp'][0] * s)
    q['lin_bp_b'] = p['lin_bp'][1] * s + t

    q['fc_w'], q['fc_b'] = p['fc']
    return q


# -----------------------------------------------------------------------------
# VipCNN forward
# -----------------------------------------------------------------------------
def vipcnn_forward(q, img_nchw, bbox_s, bbox_o, predicate, roi_size):
    B = img_nchw.shape[0]
    x = jnp.transpose(img_nchw, (0, 2, 3, 1)).astype(jnp.bfloat16)   # NCHW -> NHWC

    # ---- backbone substitute (shared_conv_layers + pre_pmps1, shared so/p) ----
    h = conv3x3(x, q['bb1_w'], q['bb1_b'], relu=True)
    shared = conv3x3(h, q['bb2_w'], q['bb2_b'], relu=True)
    pre = conv3x3(shared, q['pre_w'], q['pre_b'], relu=True)   # pre_pmps1_so == pre_pmps1_p

    # ---- PMPS1 ----
    # One fused conv, two outputs: raw [f_so | f_p] and BN+ReLU [gather_so | broadcast_p]
    raw_sp, bnrelu_sp = conv3x3_dual(pre, q['sp_w'], q['sp_b'],
                                     q['sp_scale'], q['sp_shift'])
    f_so = raw_sp[..., :128]
    f_p = raw_sp[..., 128:]
    gather_so = bnrelu_sp[..., :128]
    broadcast_p = bnrelu_sp[..., 128:]

    # gather_p = relu(bn_gp(f_p + conv_so2p(gather_so)))
    gather_p = conv3x3(gather_so, q['so2p_w'], q['so2p_b'],
                       scale=q['gp_scale'], shift=q['gp_shift'], res=f_p, relu=True)

    # broadcast_s / broadcast_o fused (both use broadcast_p and residual f_so)
    res_ss = jnp.concatenate([f_so, f_so], axis=-1)
    bso = conv3x3(broadcast_p, q['pspo_w'], q['pspo_b'],
                  scale=q['pspo_scale'], shift=q['pspo_shift'], res=res_ss, relu=True)
    broadcast_s = bso[..., :128]
    broadcast_o = bso[..., 128:]

    # ---- roi_pool (host side; data-dependent crop sizes) ----
    # Single host transfer of the 5 half-feature maps; channel concatenation of
    # post_pmps1_* is done in flattened (C-major) form on host, matching
    # torch.cat(dim=1) followed by .view(B, -1).
    gso_h, gp_h, bp_h, bs_h, bo_h = jax.device_get(
        (gather_so, gather_p, broadcast_p, broadcast_s, broadcast_o))
    to_np = lambda a: np.asarray(a).astype(np.float32)
    bs_np = np.asarray(bbox_s, dtype=np.float64)
    bo_np = np.asarray(bbox_o, dtype=np.float64)
    bu_np = union_bbox_np(bs_np, bo_np)

    def pool_flat(feat, rois):
        return roi_pool_nhwc_np(to_np(feat), rois, roi_size).reshape(B, -1)

    flat_s = jnp.asarray(np.concatenate([pool_flat(gso_h, bs_np),
                                         pool_flat(bs_h, bs_np)], axis=1))
    flat_o = jnp.asarray(np.concatenate([pool_flat(gso_h, bo_np),
                                         pool_flat(bo_h, bo_np)], axis=1))
    flat_p = jnp.asarray(np.concatenate([pool_flat(gp_h, bu_np),
                                         pool_flat(bp_h, bu_np)], axis=1))

    # ---- PMPS2 ----
    # Shared lin_so applied once to stacked [flat_s; flat_o]; per-row folded BN.
    a_so = jnp.concatenate([flat_s, flat_o], axis=0)                 # (2B, 256*rs^2)
    scale_so = jnp.concatenate([jnp.tile(q['bn1d_s'][0], (B, 1)),
                                jnp.tile(q['bn1d_o'][0], (B, 1))], axis=0)
    shift_so = jnp.concatenate([jnp.tile(q['bn1d_s'][1], (B, 1)),
                                jnp.tile(q['bn1d_o'][1], (B, 1))], axis=0)
    g_so = fused_matmul(a_so, q['lin_so_w'], q['lin_so_b'],
                        scale=scale_so, shift=shift_so, relu=True)
    g_s, g_o = g_so[:B], g_so[B:]

    # gather_p path: single K-concatenated matmul (lin_p + lin_s2p + lin_o2p), BN folded
    a_p = jnp.concatenate([flat_p, g_s, g_o], axis=1)
    g_p = fused_matmul(a_p, q['lin_pcat_w'], q['lin_pcat_b'], relu=True)

    # broadcast_p linear (BN folded) + final fc fused with the predicate reduction
    b_p = fused_matmul(g_p, q['lin_bp_w'], q['lin_bp_b'], relu=True)
    return fc_weighted_sum(b_p, q['fc_w'], q['fc_b'], predicate)     # (B,)


# -----------------------------------------------------------------------------
if __name__ == "__main__":
    roi_size = 4
    key = jax.random.PRNGKey(0)
    k_param, k_img, k_pred = jax.random.split(key, 3)

    img = jax.random.normal(k_img, (2, 3, 16, 16), jnp.float32)
    predicate = jax.random.normal(k_pred, (2, 9), jnp.float32)
    bbox_s = jnp.array([[0.10, 0.60, 0.10, 0.75],
                        [0.20, 0.90, 0.05, 0.55]], jnp.float32)
    bbox_o = jnp.array([[0.30, 0.95, 0.25, 0.90],
                        [0.05, 0.55, 0.30, 0.95]], jnp.float32)

    raw_params = init_params(k_param, roi_size)
    params = prepare_params(raw_params)
    out = vipcnn_forward(params, img, bbox_s, bbox_o, predicate, roi_size)
    jax.block_until_ready(out)
    assert out.shape == (2,)
    print("KERNEL_OK")
</pallas_src>

<mosaic_0001>
module attributes {stable_mosaic.version = 11 : i64} {
  func.func @_matmul_kernel(%arg0: i32, %arg1: memref<256x27xbf16, #tpu.memory_space<vmem>>, %arg2: memref<27x64xbf16, #tpu.memory_space<vmem>>, %arg3: memref<1x64xf32, #tpu.memory_space<vmem>>, %arg4: memref<256x64xbf16, #tpu.memory_space<vmem>>) attributes {dimension_semantics = [#tpu.dimension_semantics<parallel>], iteration_bounds = array<i64: 2>, scalar_prefetch = 0 : i64, scratch_operands = 0 : i64, tpu.core_type = #tpu.core_type<tc>, window_params = [{transform_indices = @transform_0, window_bounds = array<i64: 256, 27>}, {pipeline_mode = #tpu.pipeline_mode<synchronous>, transform_indices = @transform_1, window_bounds = array<i64: 27, 64>}, {pipeline_mode = #tpu.pipeline_mode<synchronous>, transform_indices = @transform_2, window_bounds = array<i64: 1, 64>}, {transform_indices = @transform_3, window_bounds = array<i64: 256, 64>}]} {
    %c0 = arith.constant 0 : index
    %c0_0 = arith.constant 0 : index
    %0 = vector.load %arg1[%c0, %c0_0] : memref<256x27xbf16, #tpu.memory_space<vmem>>, vector<256x27xbf16>
    %c0_1 = arith.constant 0 : index
    %c0_2 = arith.constant 0 : index
    %1 = vector.load %arg2[%c0_1, %c0_2] : memref<27x64xbf16, #tpu.memory_space<vmem>>, vector<27x64xbf16>
    %cst = arith.constant dense<0.000000e+00> : vector<256x64xf32>
    %2 = tpu.matmul %0, %1, %cst {dimension_numbers = #tpu.dot_dimension_numbers<[1], [0], [0], [1], [0, 0, 1, 1], [], []>} : vector<256x27xbf16>, vector<27x64xbf16>, vector<256x64xf32> -> vector<256x64xf32>
    %c0_3 = arith.constant 0 : index
    %c0_4 = arith.constant 0 : index
    %3 = vector.load %arg3[%c0_3, %c0_4] : memref<1x64xf32, #tpu.memory_space<vmem>>, vector<1x64xf32>
    %4 = vector.broadcast %3 : vector<1x64xf32> to vector<256x64xf32>
    %5 = arith.addf %2, %4 : vector<256x64xf32>
    %cst_5 = arith.constant 0.000000e+00 : f32
    %6 = vector.broadcast %cst_5 : f32 to vector<256x64xf32>
    %7 = arith.maximumf %5, %6 : vector<256x64xf32>
    %8 = arith.truncf %7 : vector<256x64xf32> to vector<256x64xbf16>
    %c0_6 = arith.constant 0 : index
    %c0_7 = arith.constant 0 : index
    %9 = vector.load %arg4[%c0_6, %c0_7] : memref<256x64xbf16, #tpu.memory_space<vmem>>, vector<256x64xbf16>
    tpu.vector_store %arg4[%c0_6, %c0_7], %8 {strides = array<i32>} : memref<256x64xbf16, #tpu.memory_space<vmem>>, vector<256x64xbf16>,
    return
  }
  func.func @transform_0(%arg0: i32) -> (i32, i32) {
    %c0_i32 = arith.constant 0 : i32
    %c0_i32_0 = arith.constant 0 : i32
    return %arg0, %c0_i32 : i32, i32
  }
  func.func @transform_1(%arg0: i32) -> (i32, i32) {
    %c0_i32 = arith.constant 0 : i32
    %c0_i32_0 = arith.constant 0 : i32
    %c0_i32_1 = arith.constant 0 : i32
    return %c0_i32, %c0_i32_0 : i32, i32
  }
  func.func @transform_2(%arg0: i32) -> (i32, i32) {
    %c0_i32 = arith.constant 0 : i32
    %c0_i32_0 = arith.constant 0 : i32
    %c0_i32_1 = arith.constant 0 : i32
    return %c0_i32, %c0_i32_0 : i32, i32
  }
  func.func @transform_3(%arg0: i32) -> (i32, i32) {
    %c0_i32 = arith.constant 0 : i32
    %c0_i32_0 = arith.constant 0 : i32
    return %arg0, %c0_i32 : i32, i32
  }
}

</mosaic_0001>

<bundles_post_ra>
// kernel: tpu_custom_call.1
= control target key start
LH: loop header
LB: loop body
LE: loop exit
PB: predicated region body
PF: predicated region fallthrough
CT: control target
= control target key end

     0   :  { %s766_s12 = smov 0   ;;  %s936_s0 = inlined_call_operand.vmem [shape: bf16[512,27], index: 0, kind: input, shape index: {}]   ;;  %s937_s1 = inlined_call_operand.vmem [shape: bf16[27,64], index: 1, kind: input, shape index: {}]   ;;  %s938_s2 = inlined_call_operand.vmem [shape: f32[1,64], index: 2, kind: input, shape index: {}]   ;;  %s939_s3 = inlined_call_operand.vmem [shape: bf16[512,64], index: 3, kind: output, shape index: {}]  }
   0x1 LB: > { %s604_s13 = sadd.s32 4294967295, %s743_s12   ;;  %p608_p0 = scmp.ge.s32.totalorder %s743_s12, 1  ;;  %s743_s12 = sphi %s766_s12, %s13_s12  }
   0x2   : > { %p138_p1 = scmp.lt.s32.totalorder %s743_s12, 3 }
   0x4   : > { %p139_p2 = pnand %p608_p0, %p138_p1 }
   0x5   : > { %s609_s18 = sshll.u32 (!%p139_p2), %s604_s13, 5 }
   0x6   : > { %142 = sbr.rel (%p139_p2) target bundleno = 221 (0xdd), region = 32  ;;  %p163_p3 = scmp.lt.s32.totalorder (!%p139_p2), %s609_s18, 63 }
   0xb   : > { %v683_v0 = vld [vmem:[%s937_s1 + $0x8] sm:$0xf]  ;;  %v720_v1 = vld [vmem:[%s937_s1 + $0x8] sm:$0x30]  ;;  %vm355_vm0 = vcmask 1044480   ;;  %vm356_vm1 = vcmask 1045504  }
   0xc   : > { %v684_v2 = vor.u32 %v720_v1, %v683_v0  ;;  %v745_v3 = vmov 65535   ;;  %s941_s18 = smov (!%p163_p3, %s609_s18), 63  ;;  %v719_v7 = vld [vmem:[%s937_s1] sm:$0xff]  ;;  %vm306_vm2 = vcmask 220160   ;;  %vm515_vm3 = vcmask 519168  }
   0xd   : > { %v357_v4 = vsel %vm355_vm0, 4294967295, %v745_v3  ;;  %s610_s21 = sshll.u32 %s941_s18, 2  ;;  %v828_v24 = vld [vmem:[%s938_s2] ss:$0 sm:$0xff] }
   0xe   : > { %v358_v5 = vsel %vm356_vm1, %v357_v4, 0  ;;  %s791_s24 = scalar_lea.vmem %s936_s0, %s610_s21  ;;  %s837_s29 = scalar_lea.vmem %s939_s3, %s610_s21 }
   0xf   : > { %v360_v6 = vand.u32 %v684_v2, %v358_v5  ;;  %v703_v8 = vld [vmem:[%s791_s24] sm:$0xff]  ;;  %v704_v12 = vld [vmem:[%s791_s24 + $0x8] sm:$0xff]  ;;  %v705_v16 = vld [vmem:[%s791_s24 + $0x10] sm:$0xff] }
  0x10   : > { %v707_v9 = vld [vmem:[%s791_s24 + $0x20] sm:$0xff]  ;;  %v708_v13 = vld [vmem:[%s791_s24 + $0x28] sm:$0xff]  ;;  %v709_v17 = vld [vmem:[%s791_s24 + $0x30] sm:$0xff] }
  0x11   : > { %368 = vmatpush.bf16.msra.mxu0 %v360_v6  ;;  %721 = vmatpush.bf16.msra.mxu1 %v360_v6  ;;  %v711_v10 = vld [vmem:[%s791_s24 + $0x40] sm:$0xff]  ;;  %v712_v14 = vld [vmem:[%s791_s24 + $0x48] sm:$0xff]  ;;  %v713_v18 = vld [vmem:[%s791_s24 + $0x50] sm:$0xff] }
  0x12   : > { %722 = vmatpush.bf16.msra.mxu2 %v360_v6  ;;  %723 = vmatpush.bf16.msra.mxu3 %v360_v6  ;;  %v715_v11 = vld [vmem:[%s791_s24 + $0x60] sm:$0xff]  ;;  %v716_v15 = vld [vmem:[%s791_s24 + $0x68] sm:$0xff]  ;;  %v717_v19 = vld [vmem:[%s791_s24 + $0x70] sm:$0xff] }
  0x13   : > { %v706_v20 = vld [vmem:[%s791_s24 + $0x18] sm:$0xff] }
  0x14   : > { %v710_v21 = vld [vmem:[%s791_s24 + $0x38] sm:$0xff] }
  0x15   : > { %369 = vmatpush.bf16.msra.mxu0 %v719_v7  ;;  %724 = vmatpush.bf16.msra.mxu1 %v719_v7  ;;  %v714_v22 = vld [vmem:[%s791_s24 + $0x58] sm:$0xff] }
  0x16   : > { %725 = vmatpush.bf16.msra.mxu2 %v719_v7  ;;  %726 = vmatpush.bf16.msra.mxu3 %v719_v7  ;;  %v718_v23 = vld [vmem:[%s791_s24 + $0x78] sm:$0xff] }
  0x18   : > { %685 = vmatmul.msk.bf16.vlgmr.msra.gmra.mxu0 %vm306_vm2, %v703_v8  ;;  %689 = vmatmul.msk.bf16.vlgmr.msra.gmra.mxu1 %vm306_vm2, %v707_v9 }
  0x19   : > { %693 = vmatmul.msk.bf16.vlgmr.msra.gmra.mxu2 %vm306_vm2, %v711_v10  ;;  %697 = vmatmul.msk.bf16.vlgmr.msra.gmra.mxu3 %vm306_vm2, %v715_v11 }
  0x28   : > { %686 = vmatmul.msk.bf16.gmra.mxu0 %vm306_vm2, %v704_v12  ;;  %690 = vmatmul.msk.bf16.gmra.mxu1 %vm306_vm2, %v708_v13 }
  0x29   : > { %694 = vmatmul.msk.bf16.gmra.mxu2 %vm306_vm2, %v712_v14  ;;  %698 = vmatmul.msk.bf16.gmra.mxu3 %vm306_vm2, %v716_v15 }
  0x38   : > { %687 = vmatmul.msk.bf16.gmra.mxu0 %vm306_vm2, %v705_v16  ;;  %691 = vmatmul.msk.bf16.gmra.mxu1 %vm306_vm2, %v709_v17 }
  0x39   : > { %695 = vmatmul.msk.bf16.gmra.mxu2 %vm306_vm2, %v713_v18  ;;  %699 = vmatmul.msk.bf16.gmra.mxu3 %vm306_vm2, %v717_v19 }
  0x48   : > { %688 = vmatmul.msk.bf16.gmra.mxu0 %vm306_vm2, %v706_v20  ;;  %692 = vmatmul.msk.bf16.gmra.mxu1 %vm306_vm2, %v710_v21 }
  0x49   : > { %696 = vmatmul.msk.bf16.gmra.mxu2 %vm306_vm2, %v714_v22  ;;  %700 = vmatmul.msk.bf16.gmra.mxu3 %vm306_vm2, %v718_v23 }
  0x95   : > { %v371_v25 = vpop.f32.mrf.mxu0  ;;  %v391_v26 = vpop.f32.mrf.mxu1 }
  0x96   : > { %v372_v27 = vadd.f32 %v828_v24, %v371_v25  ;;  %v392_v28 = vadd.f32 %v828_v24, %v391_v26 }
  0x98   : > { %v451_v29 = vmax.f32 %v372_v27, 0.0  ;;  %v459_v30 = vmax.f32 %v392_v28, 0.0 }
  0x9a   : > { %v483_v31 = vpack.c.bf16 %v451_v29, %v451_v29  ;;  %v491_v32 = vpack.c.bf16 %v459_v30, %v459_v30 }
  0x9c   : > { %516 = vst.msk [vmem:[%s837_s29] sm:$0xf] %vm515_vm3, %v483_v31  ;;  %v411_v33 = vpop.f32.mrf.mxu2  ;;  %v431_v34 = vpop.f32.mrf.mxu3 }
  0x9d   : > { %524 = vst.msk [vmem:[%s837_s29 + $0x20] sm:$0xf] %vm515_vm3, %v491_v32  ;;  %v412_v35 = vadd.f32 %v828_v24, %v411_v33  ;;  %v432_v36 = vadd.f32 %v828_v24, %v431_v34  ;;  %v373_v37 = vpop.f32.mrf.mxu0  ;;  %v393_v38 = vpop.f32.mrf.mxu1 }
  0x9e   : > { %v374_v39 = vadd.f32 %v828_v24, %v373_v37  ;;  %v394_v40 = vadd.f32 %v828_v24, %v393_v38 }
  0x9f   : > { %v467_v41 = vmax.f32 %v412_v35, 0.0  ;;  %v475_v42 = vmax.f32 %v432_v36, 0.0 }
  0xa0   : > { %v452_v43 = vmax.f32 %v374_v39, 0.0  ;;  %v460_v44 = vmax.f32 %v394_v40, 0.0 }
  0xa1   : > { %v499_v45 = vpack.c.bf16 %v467_v41, %v467_v41  ;;  %v507_v46 = vpack.c.bf16 %v475_v42, %v475_v42 }
  0xa2   : > { %v484_v47 = vpack.c.bf16 %v452_v43, %v452_v43  ;;  %v492_v48 = vpack.c.bf16 %v460_v44, %v460_v44 }
  0xa3   : > { %532 = vst.msk [vmem:[%s837_s29 + $0x40] sm:$0xf] %vm515_vm3, %v499_v45 }
  0xa4   : > { %540 = vst.msk [vmem:[%s837_s29 + $0x60] sm:$0xf] %vm515_vm3, %v507_v46  ;;  %v413_v49 = vpop.f32.mrf.mxu2  ;;  %v433_v50 = vpop.f32.mrf.mxu3 }
  0xa5   : > { %517 = vst.msk [vmem:[%s837_s29 + $0x4] sm:$0xf] %vm515_vm3, %v484_v47  ;;  %v414_v51 = vadd.f32 %v828_v24, %v413_v49  ;;  %v434_v52 = vadd.f32 %v828_v24, %v433_v50  ;;  %v376_v53 = vpop.f32.mrf.mxu0  ;;  %v396_v54 = vpop.f32.mrf.mxu1 }
  0xa6   : > { %525 = vst.msk [vmem:[%s837_s29 + $0x24] sm:$0xf] %vm515_vm3, %v492_v48  ;;  %v377_v55 = vadd.f32 %v828_v24, %v376_v53  ;;  %v397_v56 = vadd.f32 %v828_v24, %v396_v54 }
  0xa7   : > { %v468_v57 = vmax.f32 %v414_v51, 0.0  ;;  %v476_v58 = vmax.f32 %v434_v52, 0.0 }
  0xa8   : > { %v453_v59 = vmax.f32 %v377_v55, 0.0  ;;  %v461_v60 = vmax.f32 %v397_v56, 0.0 }
  0xa9   : > { %v500_v61 = vpack.c.bf16 %v468_v57, %v468_v57  ;;  %v508_v62 = vpack.c.bf16 %v476_v58, %v476_v58 }
  0xaa   : > { %v485_v63 = vpack.c.bf16 %v453_v59, %v453_v59  ;;  %v493_v0 = vpack.c.bf16 %v461_v60, %v461_v60 }
  0xab   : > { %533 = vst.msk [vmem:[%s837_s29 + $0x44] sm:$0xf] %vm515_vm3, %v500_v61 }
  0xac   : > { %541 = vst.msk [vmem:[%s837_s29 + $0x64] sm:$0xf] %vm515_vm3, %v508_v62  ;;  %v416_v1 = vpop.f32.mrf.mxu2  ;;  %v436_v2 = vpop.f32.mrf.mxu3 }
  0xad   : > { %518 = vst.msk [vmem:[%s837_s29 + $0x8] sm:$0xf] %vm515_vm3, %v485_v63  ;;  %v417_v3 = vadd.f32 %v828_v24, %v416_v1  ;;  %v437_v4 = vadd.f32 %v828_v24, %v436_v2  ;;  %v378_v5 = vpop.f32.mrf.mxu0  ;;  %v398_v6 = vpop.f32.mrf.mxu1 }
  0xae   : > { %526 = vst.msk [vmem:[%s837_s29 + $0x28] sm:$0xf] %vm515_vm3, %v493_v0  ;;  %v379_v7 = vadd.f32 %v828_v24, %v378_v5  ;;  %v399_v8 = vadd.f32 %v828_v24, %v398_v6 }
  0xaf   : > { %v469_v9 = vmax.f32 %v417_v3, 0.0  ;;  %v477_v10 = vmax.f32 %v437_v4, 0.0 }
  0xb0   : > { %v454_v11 = vmax.f32 %v379_v7, 0.0  ;;  %v462_v12 = vmax.f32 %v399_v8, 0.0 }
  0xb1   : > { %v501_v13 = vpack.c.bf16 %v469_v9, %v469_v9  ;;  %v509_v14 = vpack.c.bf16 %v477_v10, %v477_v10 }
  0xb2   : > { %v486_v15 = vpack.c.bf16 %v454_v11, %v454_v11  ;;  %v494_v16 = vpack.c.bf16 %v462_v12, %v462_v12 }
  0xb3   : > { %534 = vst.msk [vmem:[%s837_s29 + $0x48] sm:$0xf] %vm515_vm3, %v501_v13 }
  0xb4   : > { %542 = vst.msk [vmem:[%s837_s29 + $0x68] sm:$0xf] %vm515_vm3, %v509_v14  ;;  %v418_v17 = vpop.f32.mrf.mxu2  ;;  %v438_v18 = vpop.f32.mrf.mxu3 }
  0xb5   : > { %519 = vst.msk [vmem:[%s837_s29 + $0xc] sm:$0xf] %vm515_vm3, %v486_v15  ;;  %v419_v19 = vadd.f32 %v828_v24, %v418_v17  ;;  %v439_v20 = vadd.f32 %v828_v24, %v438_v18  ;;  %v381_v21 = vpop.f32.mrf.mxu0  ;;  %v401_v22 = vpop.f32.mrf.mxu1 }
  0xb6   : > { %527 = vst.msk [vmem:[%s837_s29 + $0x2c] sm:$0xf] %vm515_vm3, %v494_v16  ;;  %v382_v23 = vadd.f32 %v828_v24, %v381_v21  ;;  %v402_v25 = vadd.f32 %v828_v24, %v401_v22 }
  0xb7   : > { %v470_v26 = vmax.f32 %v419_v19, 0.0  ;;  %v478_v27 = vmax.f32 %v439_v20, 0.0 }
  0xb8   : > { %v455_v28 = vmax.f32 %v382_v23, 0.0  ;;  %v463_v29 = vmax.f32 %v402_v25, 0.0 }
  0xb9   : > { %v502_v30 = vpack.c.bf16 %v470_v26, %v470_v26  ;;  %v510_v31 = vpack.c.bf16 %v478_v27, %v478_v27 }
  0xba   : > { %v487_v32 = vpack.c.bf16 %v455_v28, %v455_v28  ;;  %v495_v33 = vpack.c.bf16 %v463_v29, %v463_v29 }
  0xbb   : > { %535 = vst.msk [vmem:[%s837_s29 + $0x4c] sm:$0xf] %vm515_vm3, %v502_v30 }
  0xbc   : > { %543 = vst.msk [vmem:[%s837_s29 + $0x6c] sm:$0xf] %vm515_vm3, %v510_v31  ;;  %v421_v34 = vpop.f32.mrf.mxu2  ;;  %v441_v35 = vpop.f32.mrf.mxu3 }
  0xbd   : > { %520 = vst.msk [vmem:[%s837_s29 + $0x10] sm:$0xf] %vm515_vm3, %v487_v32  ;;  %v422_v36 = vadd.f32 %v828_v24, %v421_v34  ;;  %v442_v37 = vadd.f32 %v828_v24, %v441_v35  ;;  %v383_v38 = vpop.f32.mrf.mxu0  ;;  %v403_v39 = vpop.f32.mrf.mxu1 }
  0xbe   : > { %528 = vst.msk [vmem:[%s837_s29 + $0x30] sm:$0xf] %vm515_vm3, %v495_v33  ;;  %v384_v40 = vadd.f32 %v828_v24, %v383_v38  ;;  %v404_v41 = vadd.f32 %v828_v24, %v403_v39 }
  0xbf   : > { %v471_v42 = vmax.f32 %v422_v36, 0.0  ;;  %v479_v43 = vmax.f32 %v442_v37, 0.0 }
  0xc0   : > { %v456_v44 = vmax.f32 %v384_v40, 0.0  ;;  %v464_v45 = vmax.f32 %v404_v41, 0.0 }
  0xc1   : > { %v503_v46 = vpack.c.bf16 %v471_v42, %v471_v42  ;;  %v511_v47 = vpack.c.bf16 %v479_v43, %v479_v43 }
  0xc2   : > { %v488_v48 = vpack.c.bf16 %v456_v44, %v456_v44  ;;  %v496_v49 = vpack.c.bf16 %v464_v45, %v464_v45 }
  0xc3   : > { %536 = vst.msk [vmem:[%s837_s29 + $0x50] sm:$0xf] %vm515_vm3, %v503_v46 }
  0xc4   : > { %544 = vst.msk [vmem:[%s837_s29 + $0x70] sm:$0xf] %vm515_vm3, %v511_v47  ;;  %v423_v50 = vpop.f32.mrf.mxu2  ;;  %v443_v51 = vpop.f32.mrf.mxu3 }
  0xc5   : > { %521 = vst.msk [vmem:[%s837_s29 + $0x14] sm:$0xf] %vm515_vm3, %v488_v48  ;;  %v424_v52 = vadd.f32 %v828_v24, %v423_v50  ;;  %v444_v53 = vadd.f32 %v828_v24, %v443_v51  ;;  %v386_v54 = vpop.f32.mrf.mxu0  ;;  %v406_v55 = vpop.f32.mrf.mxu1 }
  0xc6   : > { %529 = vst.msk [vmem:[%s837_s29 + $0x34] sm:$0xf] %vm515_vm3, %v496_v49  ;;  %v387_v56 = vadd.f32 %v828_v24, %v386_v54  ;;  %v407_v57 = vadd.f32 %v828_v24, %v406_v55 }
  0xc7   : > { %v472_v58 = vmax.f32 %v424_v52, 0.0  ;;  %v480_v59 = vmax.f32 %v444_v53, 0.0 }
  0xc8   : > { %v457_v60 = vmax.f32 %v387_v56, 0.0  ;;  %v465_v61 = vmax.f32 %v407_v57, 0.0 }
  0xc9   : > { %v504_v62 = vpack.c.bf16 %v472_v58, %v472_v58  ;;  %v512_v63 = vpack.c.bf16 %v480_v59, %v480_v59 }
  0xca   : > { %v489_v0 = vpack.c.bf16 %v457_v60, %v457_v60  ;;  %v497_v1 = vpack.c.bf16 %v465_v61, %v465_v61 }
  0xcb   : > { %537 = vst.msk [vmem:[%s837_s29 + $0x54] sm:$0xf] %vm515_vm3, %v504_v62 }
  0xcc   : > { %545 = vst.msk [vmem:[%s837_s29 + $0x74] sm:$0xf] %vm515_vm3, %v512_v63  ;;  %v426_v2 = vpop.f32.mrf.mxu2  ;;  %v446_v3 = vpop.f32.mrf.mxu3 }
  0xcd   : > { %522 = vst.msk [vmem:[%s837_s29 + $0x18] sm:$0xf] %vm515_vm3, %v489_v0  ;;  %v427_v4 = vadd.f32 %v828_v24, %v426_v2  ;;  %v447_v5 = vadd.f32 %v828_v24, %v446_v3  ;;  %v388_v6 = vpop.f32.mrf.mxu0  ;;  %v408_v7 = vpop.f32.mrf.mxu1 }
  0xce   : > { %530 = vst.msk [vmem:[%s837_s29 + $0x38] sm:$0xf] %vm515_vm3, %v497_v1  ;;  %v389_v8 = vadd.f32 %v828_v24, %v388_v6  ;;  %v409_v9 = vadd.f32 %v828_v24, %v408_v7 }
  0xcf   : > { %v473_v10 = vmax.f32 %v427_v4, 0.0  ;;  %v481_v11 = vmax.f32 %v447_v5, 0.0 }
  0xd0   : > { %v458_v12 = vmax.f32 %v389_v8, 0.0  ;;  %v466_v13 = vmax.f32 %v409_v9, 0.0 }
  0xd1   : > { %v505_v14 = vpack.c.bf16 %v473_v10, %v473_v10  ;;  %v513_v15 = vpack.c.bf16 %v481_v11, %v481_v11 }
  0xd2   : > { %v490_v16 = vpack.c.bf16 %v458_v12, %v458_v12  ;;  %v498_v17 = vpack.c.bf16 %v466_v13, %v466_v13 }
  0xd3   : > { %538 = vst.msk [vmem:[%s837_s29 + $0x58] sm:$0xf] %vm515_vm3, %v505_v14 }
  0xd4   : > { %546 = vst.msk [vmem:[%s837_s29 + $0x78] sm:$0xf] %vm515_vm3, %v513_v15  ;;  %v428_v18 = vpop.f32.mrf.mxu2  ;;  %v448_v19 = vpop.f32.mrf.mxu3 }
  0xd5   : > { %523 = vst.msk [vmem:[%s837_s29 + $0x1c] sm:$0xf] %vm515_vm3, %v490_v16  ;;  %v429_v20 = vadd.f32 %v828_v24, %v428_v18  ;;  %v449_v21 = vadd.f32 %v828_v24, %v448_v19 }
  0xd6   : > { %531 = vst.msk [vmem:[%s837_s29 + $0x3c] sm:$0xf] %vm515_vm3, %v498_v17 }
  0xd7   : > { %v474_v22 = vmax.f32 %v429_v20, 0.0  ;;  %v482_v23 = vmax.f32 %v449_v21, 0.0 }
  0xd9   : > { %v506_v25 = vpack.c.bf16 %v474_v22, %v474_v22  ;;  %v514_v26 = vpack.c.bf16 %v482_v23, %v482_v23 }
  0xdb   : > { %539 = vst.msk [vmem:[%s837_s29 + $0x5c] sm:$0xf] %vm515_vm3, %v506_v25 }
  0xdc   : > { %547 = vst.msk [vmem:[%s837_s29 + $0x7c] sm:$0xf] %vm515_vm3, %v514_v26 }
  0xdd PF: > { %s13_s12 = sadd.s32 1, %s743_s12  }
  0xde   : > { %p10_p4 = scmp.ge.s32.totalorder %s13_s12, 4  }
  0xe0   :  { %12 = sbr.rel (!%p10_p4) target bundleno = 1 (0x1), region = 62 }

</bundles_post_ra>
